<compile_context>
chip_gen: v5e
topology: v5e:2x2
jax: 0.10.0
libtpu: 0.0.40
codegen_flags: <defaults>
</compile_context>

<pallas_src>
import functools

import jax
import jax.numpy as jnp
from jax import lax
from jax.experimental import pallas as pl
from jax.experimental.pallas import tpu as pltpu


def _round_up(x, m):
    return (x + m - 1) // m * m


def rnn_recurrence_kernel(u_ref, wh_ref, hT_ref, h_scratch, *, unroll):
    """Grid = (batch blocks, time chunks). Each step consumes a (Tc, Bblk, Hp) slab
    of precomputed input projections and advances the hidden state Tc steps."""
    c = pl.program_id(1)  # time-chunk index (innermost, sequential)

    @pl.when(c == 0)
    def _():
        h_scratch[...] = jnp.zeros_like(h_scratch)  # h0 = 0 for this batch block

    wh = wh_ref[...]          # (Hp, Hp) recurrent weight, VMEM-resident for the loop
    tc = u_ref.shape[0]       # static chunk length

    def step(t, h):
        # h_t = tanh(u_t + h_{t-1} @ W_hh^T); only this matmul is serial.
        return jnp.tanh(
            u_ref[t] + jnp.dot(h, wh, preferred_element_type=jnp.float32)
        )

    h = lax.fori_loop(0, tc, step, h_scratch[...], unroll=unroll)
    h_scratch[...] = h

    # Last time chunk: emit the lane-dense final hidden state h_T.
    @pl.when(c == pl.num_programs(1) - 1)
    def _():
        hT_ref[...] = h.astype(hT_ref.dtype)


def rnn_forward(x, w_ih, w_hh, b_ih, b_hh, w_fc, b_fc, *, time_chunk=128):
    """x: (B, T, I) float32, batch_first — matches the PyTorch module."""
    B, T, I = x.shape
    H = w_ih.shape[0]

    # --- padding / tiling choices -------------------------------------------
    B_pad = _round_up(max(B, 8), 8)            # sublane-aligned batch
    H_pad = _round_up(max(H, 128), 128)        # lane-dense hidden dim
    Tc = min(T, time_chunk)                    # timesteps per grid step
    T_pad = _round_up(T, Tc)

    # Split batch into blocks for v7x megacore (harmless on 1-TC chips).
    num_b_blocks = 2 if (B_pad >= 16 and B_pad % 16 == 0) else 1
    b_blk = B_pad // num_b_blocks

    # --- hoisted input projection (one big MXU-friendly matmul, via XLA) -----
    # u[b, t, :] = x[b, t, :] @ W_ih^T + b_ih + b_hh
    u = jnp.einsum("bti,hi->bth", x, w_ih) + (b_ih + b_hh)       # (B, T, H)
    u = jnp.transpose(u, (1, 0, 2)).astype(jnp.float32)          # (T, B, H)
    # Prepend zero timesteps (exact no-ops since h0 = 0), pad B/H for alignment.
    u = jnp.pad(u, ((T_pad - T, 0), (0, B_pad - B), (0, H_pad - H)))

    # Recurrent weight, pre-transposed and zero-padded to (Hp, Hp).
    wh = jnp.pad(w_hh.T, ((0, H_pad - H), (0, H_pad - H))).astype(jnp.float32)

    unroll = Tc if Tc <= 32 else 8

    grid_spec = pltpu.PrefetchScalarGridSpec(
        num_scalar_prefetch=0,
        grid=(num_b_blocks, T_pad // Tc),
        in_specs=[
            pl.BlockSpec((Tc, b_blk, H_pad), lambda b, c: (c, b, 0)),  # u chunk
            pl.BlockSpec((H_pad, H_pad), lambda b, c: (0, 0)),         # W_hh^T
        ],
        out_specs=pl.BlockSpec((b_blk, H_pad), lambda b, c: (b, 0)),   # h_T block
        scratch_shapes=[pltpu.VMEM((b_blk, H_pad), jnp.float32)],      # hidden carry
    )

    h_T = pl.pallas_call(
        functools.partial(rnn_recurrence_kernel, unroll=unroll),
        out_shape=jax.ShapeDtypeStruct((B_pad, H_pad), jnp.float32),
        grid_spec=grid_spec,
        compiler_params=pltpu.CompilerParams(
            # batch blocks are independent; time is a serial recurrence
            dimension_semantics=("parallel", "arbitrary"),
        ),
    )(u, wh)

    # Final FC head runs once on a tiny (B, H) tensor; leave it to XLA.
    h_T = h_T[:B, :H]
    return h_T @ w_fc.T + b_fc


def rnn_reference(x, w_ih, w_hh, b_ih, b_hh, w_fc, b_fc):
    """Pure-JAX reference mirroring torch.nn.RNN(batch_first=True) + Linear."""
    B, T, _ = x.shape
    H = w_ih.shape[0]
    h = jnp.zeros((B, H), jnp.float32)
    for t in range(T):
        h = jnp.tanh(x[:, t, :] @ w_ih.T + b_ih + h @ w_hh.T + b_hh)
    return h @ w_fc.T + b_fc


if __name__ == "__main__":
    # Small shapes consistent with the module's forward.
    B, T, I, H, O = 8, 8, 16, 32, 8

    key = jax.random.PRNGKey(0)
    keys = jax.random.split(key, 7)
    k = 1.0 / jnp.sqrt(H)  # PyTorch-style uniform(-1/sqrt(H), 1/sqrt(H)) init

    x = jax.random.normal(keys[0], (B, T, I), jnp.float32)
    w_ih = jax.random.uniform(keys[1], (H, I), jnp.float32, -k, k)
    w_hh = jax.random.uniform(keys[2], (H, H), jnp.float32, -k, k)
    b_ih = jax.random.uniform(keys[3], (H,), jnp.float32, -k, k)
    b_hh = jax.random.uniform(keys[4], (H,), jnp.float32, -k, k)
    w_fc = jax.random.uniform(keys[5], (O, H), jnp.float32, -k, k)
    b_fc = jax.random.uniform(keys[6], (O,), jnp.float32, -k, k)

    out = rnn_forward(x, w_ih, w_hh, b_ih, b_hh, w_fc, b_fc)
    out = jax.block_until_ready(out)

    ref = rnn_reference(x, w_ih, w_hh, b_ih, b_hh, w_fc, b_fc)
    assert out.shape == (B, O)
    assert jnp.allclose(out, ref, atol=2e-5, rtol=2e-5), "mismatch vs reference"

    print("KERNEL_OK")
</pallas_src>

<mosaic_0001>
module attributes {stable_mosaic.version = 11 : i64} {
  func.func @rnn_recurrence_kernel(%arg0: i32, %arg1: i32, %arg2: memref<8x8x128xf32, #tpu.memory_space<vmem>>, %arg3: memref<128x128xf32, #tpu.memory_space<vmem>>, %arg4: memref<8x128xf32, #tpu.memory_space<vmem>>, %arg5: memref<8x128xf32, #tpu.memory_space<vmem>>) attributes {dimension_semantics = [#tpu.dimension_semantics<parallel>, #tpu.dimension_semantics<arbitrary>], iteration_bounds = array<i64: 1, 1>, scalar_prefetch = 0 : i64, scratch_operands = 1 : i64, tpu.core_type = #tpu.core_type<tc>, window_params = [{transform_indices = @transform_0, window_bounds = array<i64: 8, 8, 128>}, {pipeline_mode = #tpu.pipeline_mode<synchronous>, transform_indices = @transform_1, window_bounds = array<i64: 128, 128>}, {transform_indices = @transform_2, window_bounds = array<i64: 8, 128>}]} {
    %c0_i32 = arith.constant 0 : i32
    %0 = arith.cmpi eq, %arg1, %c0_i32 : i32
    %1 = arith.extui %0 : i1 to i32
    %c0_i32_0 = arith.constant 0 : i32
    %2 = arith.cmpi ne, %1, %c0_i32_0 : i32
    scf.if %2 {
      %cst_32 = arith.constant 0.000000e+00 : f32
      %57 = vector.broadcast %cst_32 : f32 to vector<8x128xf32>
      %c0_33 = arith.constant 0 : index
      %c0_34 = arith.constant 0 : index
      %58 = vector.load %arg5[%c0_33, %c0_34] : memref<8x128xf32, #tpu.memory_space<vmem>>, vector<8x128xf32>
      tpu.vector_store %arg5[%c0_33, %c0_34], %57 {strides = array<i32>} : memref<8x128xf32, #tpu.memory_space<vmem>>, vector<8x128xf32>,
    } else {
    }
    %c0 = arith.constant 0 : index
    %c0_1 = arith.constant 0 : index
    %3 = vector.load %arg3[%c0, %c0_1] : memref<128x128xf32, #tpu.memory_space<vmem>>, vector<128x128xf32>
    %c0_2 = arith.constant 0 : index
    %c0_3 = arith.constant 0 : index
    %4 = vector.load %arg5[%c0_2, %c0_3] : memref<8x128xf32, #tpu.memory_space<vmem>>, vector<8x128xf32>
    %c0_i32_4 = arith.constant 0 : i32
    %5 = arith.index_cast %c0_i32_4 : i32 to index
    %c0_5 = arith.constant 0 : index
    %c0_6 = arith.constant 0 : index
    %6 = vector.load %arg2[%5, %c0_5, %c0_6] : memref<8x8x128xf32, #tpu.memory_space<vmem>>, vector<1x8x128xf32>
    %7 = vector.shape_cast %6 : vector<1x8x128xf32> to vector<8x128xf32>
    %cst = arith.constant dense<0.000000e+00> : vector<8x128xf32>
    %8 = tpu.matmul %4, %3, %cst {dimension_numbers = #tpu.dot_dimension_numbers<[1], [0], [0], [1], [0, 0, 1, 1], [], []>} : vector<8x128xf32>, vector<128x128xf32>, vector<8x128xf32> -> vector<8x128xf32>
    %9 = arith.addf %7, %8 : vector<8x128xf32>
    %10 = math.tanh %9 : vector<8x128xf32>
    %c1_i32 = arith.constant 1 : i32
    %11 = arith.index_cast %c1_i32 : i32 to index
    %c0_7 = arith.constant 0 : index
    %c0_8 = arith.constant 0 : index
    %12 = vector.load %arg2[%11, %c0_7, %c0_8] : memref<8x8x128xf32, #tpu.memory_space<vmem>>, vector<1x8x128xf32>
    %13 = vector.shape_cast %12 : vector<1x8x128xf32> to vector<8x128xf32>
    %cst_9 = arith.constant dense<0.000000e+00> : vector<8x128xf32>
    %14 = tpu.matmul %10, %3, %cst_9 {dimension_numbers = #tpu.dot_dimension_numbers<[1], [0], [0], [1], [0, 0, 1, 1], [], []>} : vector<8x128xf32>, vector<128x128xf32>, vector<8x128xf32> -> vector<8x128xf32>
    %15 = arith.addf %13, %14 : vector<8x128xf32>
    %16 = math.tanh %15 : vector<8x128xf32>
    %c2_i32 = arith.constant 2 : i32
    %17 = arith.index_cast %c2_i32 : i32 to index
    %c0_10 = arith.constant 0 : index
    %c0_11 = arith.constant 0 : index
    %18 = vector.load %arg2[%17, %c0_10, %c0_11] : memref<8x8x128xf32, #tpu.memory_space<vmem>>, vector<1x8x128xf32>
    %19 = vector.shape_cast %18 : vector<1x8x128xf32> to vector<8x128xf32>
    %cst_12 = arith.constant dense<0.000000e+00> : vector<8x128xf32>
    %20 = tpu.matmul %16, %3, %cst_12 {dimension_numbers = #tpu.dot_dimension_numbers<[1], [0], [0], [1], [0, 0, 1, 1], [], []>} : vector<8x128xf32>, vector<128x128xf32>, vector<8x128xf32> -> vector<8x128xf32>
    %21 = arith.addf %19, %20 : vector<8x128xf32>
    %22 = math.tanh %21 : vector<8x128xf32>
    %c3_i32 = arith.constant 3 : i32
    %23 = arith.index_cast %c3_i32 : i32 to index
    %c0_13 = arith.constant 0 : index
    %c0_14 = arith.constant 0 : index
    %24 = vector.load %arg2[%23, %c0_13, %c0_14] : memref<8x8x128xf32, #tpu.memory_space<vmem>>, vector<1x8x128xf32>
    %25 = vector.shape_cast %24 : vector<1x8x128xf32> to vector<8x128xf32>
    %cst_15 = arith.constant dense<0.000000e+00> : vector<8x128xf32>
    %26 = tpu.matmul %22, %3, %cst_15 {dimension_numbers = #tpu.dot_dimension_numbers<[1], [0], [0], [1], [0, 0, 1, 1], [], []>} : vector<8x128xf32>, vector<128x128xf32>, vector<8x128xf32> -> vector<8x128xf32>
    %27 = arith.addf %25, %26 : vector<8x128xf32>
    %28 = math.tanh %27 : vector<8x128xf32>
    %c4_i32 = arith.constant 4 : i32
    %29 = arith.index_cast %c4_i32 : i32 to index
    %c0_16 = arith.constant 0 : index
    %c0_17 = arith.constant 0 : index
    %30 = vector.load %arg2[%29, %c0_16, %c0_17] : memref<8x8x128xf32, #tpu.memory_space<vmem>>, vector<1x8x128xf32>
    %31 = vector.shape_cast %30 : vector<1x8x128xf32> to vector<8x128xf32>
    %cst_18 = arith.constant dense<0.000000e+00> : vector<8x128xf32>
    %32 = tpu.matmul %28, %3, %cst_18 {dimension_numbers = #tpu.dot_dimension_numbers<[1], [0], [0], [1], [0, 0, 1, 1], [], []>} : vector<8x128xf32>, vector<128x128xf32>, vector<8x128xf32> -> vector<8x128xf32>
    %33 = arith.addf %31, %32 : vector<8x128xf32>
    %34 = math.tanh %33 : vector<8x128xf32>
    %c5_i32 = arith.constant 5 : i32
    %35 = arith.index_cast %c5_i32 : i32 to index
    %c0_19 = arith.constant 0 : index
    %c0_20 = arith.constant 0 : index
    %36 = vector.load %arg2[%35, %c0_19, %c0_20] : memref<8x8x128xf32, #tpu.memory_space<vmem>>, vector<1x8x128xf32>
    %37 = vector.shape_cast %36 : vector<1x8x128xf32> to vector<8x128xf32>
    %cst_21 = arith.constant dense<0.000000e+00> : vector<8x128xf32>
    %38 = tpu.matmul %34, %3, %cst_21 {dimension_numbers = #tpu.dot_dimension_numbers<[1], [0], [0], [1], [0, 0, 1, 1], [], []>} : vector<8x128xf32>, vector<128x128xf32>, vector<8x128xf32> -> vector<8x128xf32>
    %39 = arith.addf %37, %38 : vector<8x128xf32>
    %40 = math.tanh %39 : vector<8x128xf32>
    %c6_i32 = arith.constant 6 : i32
    %41 = arith.index_cast %c6_i32 : i32 to index
    %c0_22 = arith.constant 0 : index
    %c0_23 = arith.constant 0 : index
    %42 = vector.load %arg2[%41, %c0_22, %c0_23] : memref<8x8x128xf32, #tpu.memory_space<vmem>>, vector<1x8x128xf32>
    %43 = vector.shape_cast %42 : vector<1x8x128xf32> to vector<8x128xf32>
    %cst_24 = arith.constant dense<0.000000e+00> : vector<8x128xf32>
    %44 = tpu.matmul %40, %3, %cst_24 {dimension_numbers = #tpu.dot_dimension_numbers<[1], [0], [0], [1], [0, 0, 1, 1], [], []>} : vector<8x128xf32>, vector<128x128xf32>, vector<8x128xf32> -> vector<8x128xf32>
    %45 = arith.addf %43, %44 : vector<8x128xf32>
    %46 = math.tanh %45 : vector<8x128xf32>
    %c7_i32 = arith.constant 7 : i32
    %47 = arith.index_cast %c7_i32 : i32 to index
    %c0_25 = arith.constant 0 : index
    %c0_26 = arith.constant 0 : index
    %48 = vector.load %arg2[%47, %c0_25, %c0_26] : memref<8x8x128xf32, #tpu.memory_space<vmem>>, vector<1x8x128xf32>
    %49 = vector.shape_cast %48 : vector<1x8x128xf32> to vector<8x128xf32>
    %cst_27 = arith.constant dense<0.000000e+00> : vector<8x128xf32>
    %50 = tpu.matmul %46, %3, %cst_27 {dimension_numbers = #tpu.dot_dimension_numbers<[1], [0], [0], [1], [0, 0, 1, 1], [], []>} : vector<8x128xf32>, vector<128x128xf32>, vector<8x128xf32> -> vector<8x128xf32>
    %51 = arith.addf %49, %50 : vector<8x128xf32>
    %52 = math.tanh %51 : vector<8x128xf32>
    %c8_i32 = arith.constant 8 : i32
    %c0_28 = arith.constant 0 : index
    %c0_29 = arith.constant 0 : index
    %53 = vector.load %arg5[%c0_28, %c0_29] : memref<8x128xf32, #tpu.memory_space<vmem>>, vector<8x128xf32>
    tpu.vector_store %arg5[%c0_28, %c0_29], %52 {strides = array<i32>} : memref<8x128xf32, #tpu.memory_space<vmem>>, vector<8x128xf32>,
    %c0_i32_30 = arith.constant 0 : i32
    %54 = arith.cmpi eq, %arg1, %c0_i32_30 : i32
    %55 = arith.extui %54 : i1 to i32
    %c0_i32_31 = arith.constant 0 : i32
    %56 = arith.cmpi ne, %55, %c0_i32_31 : i32
    scf.if %56 {
      %c0_32 = arith.constant 0 : index
      %c0_33 = arith.constant 0 : index
      %57 = vector.load %arg4[%c0_32, %c0_33] : memref<8x128xf32, #tpu.memory_space<vmem>>, vector<8x128xf32>
      tpu.vector_store %arg4[%c0_32, %c0_33], %52 {strides = array<i32>} : memref<8x128xf32, #tpu.memory_space<vmem>>, vector<8x128xf32>,
    } else {
    }
    return
  }
  func.func @transform_0(%arg0: i32, %arg1: i32) -> (i32, i32, i32) {
    %c0_i32 = arith.constant 0 : i32
    %c0_i32_0 = arith.constant 0 : i32
    return %arg1, %arg0, %c0_i32 : i32, i32, i32
  }
  func.func @transform_1(%arg0: i32, %arg1: i32) -> (i32, i32) {
    %c0_i32 = arith.constant 0 : i32
    %c0_i32_0 = arith.constant 0 : i32
    %c0_i32_1 = arith.constant 0 : i32
    return %c0_i32, %c0_i32_0 : i32, i32
  }
  func.func @transform_2(%arg0: i32, %arg1: i32) -> (i32, i32) {
    %c0_i32 = arith.constant 0 : i32
    %c0_i32_0 = arith.constant 0 : i32
    return %arg0, %c0_i32 : i32, i32
  }
}

</mosaic_0001>

<bundles_post_ra>
// kernel: tpu_custom_call.1
= control target key start
LH: loop header
LB: loop body
LE: loop exit
PB: predicated region body
PF: predicated region fallthrough
CT: control target
= control target key end

     0   :  { %7 = vsyncpa [#allocation4], 0  ;;  %s570_s0 = inlined_call_operand.hbm [shape: f32[8,8,128], index: 0, kind: input, shape index: {}]   ;;  %s571_s1 = inlined_call_operand.hbm [shape: f32[128,128], index: 1, kind: input, shape index: {}]   ;;  %s572_s2 = inlined_call_operand.hbm [shape: f32[8,128], index: 2, kind: output, shape index: {}]  }
   0x1   :  { %8 = vsyncpa [#allocation7], 0 }
   0x2   :  { %9 = vsyncpa [#allocation5], 0  ;;  %s14_s11 = sshll.u32 %s570_s0, 4  ;;  %s380_s12 = smov [#allocation3]   ;;  %s15_s11 = int_to_ptr.hbm [resolvable:$true] %s14_s11 }
   0x3   :  { %s16_s13 = sshll.u32 %s380_s12, 4  ;;  %s27_s16 = sshll.u32 %s571_s1, 4  ;;  %s17_s13 = int_to_ptr.vmem [resolvable:$true] %s16_s13  ;;  %s28_s16 = int_to_ptr.hbm [resolvable:$true] %s27_s16 }
   0x4   :  { %s381_s17 = smov 128   ;;  %s382_s18 = smov 8  }
   0x5   :  { %22 = dma.hbm_to_vmem [thread:$0]  %s15_s11, 1024, %s17_s13, [#allocation4], %s381_s17, %s381_s17, %s382_s18  }
   0x6   :  { %s383_s19 = smov [#allocation6]  }
   0x7   :  { %s29_s20 = sshll.u32 %s383_s19, 4  ;;  %s30_s20 = int_to_ptr.vmem [resolvable:$true] %s29_s20 }
   0x8   :  { %35 = dma.hbm_to_vmem [thread:$0]  %s28_s16, 2048, %s30_s20, [#allocation7], %s381_s17, %s381_s17, %s382_s18  }
   0x9   :  { %374 = dma.done.wait [#allocation4], 1024  }
   0xa   :  { %375 = vsyncadd [#allocation4], 4294966272 }
   0xb   :  { %376 = dma.done.wait [#allocation7], 2048  }
   0xc   :  { %377 = vsyncadd [#allocation7], 4294965248  ;;  %v407_v0 = vld [vmem:[#allocation6 + $0x78] sm:$0xff]  ;;  %v409_v1 = vld [vmem:[#allocation6 + $0x70] sm:$0xff]  ;;  %v384_v16 = vmov 0.0   ;;  %s385_s0 = smov [#allocation8]  }
   0xd   :  { %67 = vmatpush.msra.mxu0 %v407_v0  ;;  %91 = vmatpush.msra.mxu1 %v407_v0  ;;  %v413_v2 = vld [vmem:[#allocation6 + $0x68] sm:$0xff]  ;;  %v419_v3 = vld [vmem:[#allocation6 + $0x60] sm:$0xff]  ;;  %v425_v4 = vld [vmem:[#allocation6 + $0x58] sm:$0xff]  ;;  %s267_s1 = sshll.u32 %s385_s0, 4  ;;  %s269_s23 = sshll.u32 %s572_s2, 4  ;;  %s268_s1 = int_to_ptr.vmem [resolvable:$true] %s267_s1  ;;  %s270_s23 = int_to_ptr.hbm [resolvable:$true] %s269_s23 }
   0xe   :  { %115 = vmatpush.msra.mxu2 %v407_v0  ;;  %139 = vmatpush.msra.mxu3 %v407_v0  ;;  %v431_v5 = vld [vmem:[#allocation6 + $0x50] sm:$0xff]  ;;  %v437_v6 = vld [vmem:[#allocation6 + $0x48] sm:$0xff]  ;;  %v443_v7 = vld [vmem:[#allocation6 + $0x40] sm:$0xff] }
   0xf   :  { %68 = vmatpush.msra.mxu0 %v409_v1  ;;  %92 = vmatpush.msra.mxu1 %v409_v1  ;;  %v449_v8 = vld [vmem:[#allocation6 + $0x38] sm:$0xff]  ;;  %v455_v9 = vld [vmem:[#allocation6 + $0x30] sm:$0xff]  ;;  %v461_v10 = vld [vmem:[#allocation6 + $0x28] sm:$0xff] }
  0x10   :  { %116 = vmatpush.msra.mxu2 %v409_v1  ;;  %140 = vmatpush.msra.mxu3 %v409_v1  ;;  %v467_v11 = vld [vmem:[#allocation6 + $0x20] sm:$0xff]  ;;  %v473_v12 = vld [vmem:[#allocation6 + $0x18] sm:$0xff]  ;;  %v479_v13 = vld [vmem:[#allocation6 + $0x10] sm:$0xff] }
  0x11   :  { %69 = vmatpush.msra.mxu0 %v413_v2  ;;  %93 = vmatpush.msra.mxu1 %v413_v2  ;;  %v485_v14 = vld [vmem:[#allocation6 + $0x8] sm:$0xff]  ;;  %v491_v15 = vld [vmem:[#allocation6] sm:$0xff]  ;;  %v114_v25 = vld [vmem:[#allocation3 + $0x10] sm:$0xff] }
  0x12   :  { %117 = vmatpush.msra.mxu2 %v413_v2  ;;  %141 = vmatpush.msra.mxu3 %v413_v2  ;;  %v66_v17 = vld [vmem:[#allocation3] sm:$0xff]  ;;  %v90_v21 = vld [vmem:[#allocation3 + $0x8] sm:$0xff]  ;;  %v138_v29 = vld [vmem:[#allocation3 + $0x18] sm:$0xff] }
  0x13   :  { %70 = vmatpush.msra.mxu0 %v419_v3  ;;  %94 = vmatpush.msra.mxu1 %v419_v3  ;;  %v162_v33 = vld [vmem:[#allocation3 + $0x20] sm:$0xff]  ;;  %v186_v37 = vld [vmem:[#allocation3 + $0x28] sm:$0xff]  ;;  %v210_v41 = vld [vmem:[#allocation3 + $0x30] sm:$0xff] }
  0x14   :  { %118 = vmatpush.msra.mxu2 %v419_v3  ;;  %142 = vmatpush.msra.mxu3 %v419_v3  ;;  %v234_v45 = vld [vmem:[#allocation3 + $0x38] sm:$0xff] }
  0x15   :  { %71 = vmatpush.msra.mxu0 %v425_v4  ;;  %95 = vmatpush.msra.mxu1 %v425_v4 }
  0x16   :  { %119 = vmatpush.msra.mxu2 %v425_v4  ;;  %143 = vmatpush.msra.mxu3 %v425_v4 }
  0x17   :  { %72 = vmatpush.msra.mxu0 %v431_v5  ;;  %96 = vmatpush.msra.mxu1 %v431_v5 }
  0x18   :  { %120 = vmatpush.msra.mxu2 %v431_v5  ;;  %144 = vmatpush.msra.mxu3 %v431_v5 }
  0x19   :  { %73 = vmatpush.msra.mxu0 %v437_v6  ;;  %97 = vmatpush.msra.mxu1 %v437_v6 }
  0x1a   :  { %121 = vmatpush.msra.mxu2 %v437_v6  ;;  %145 = vmatpush.msra.mxu3 %v437_v6 }
  0x1b   :  { %74 = vmatpush.msra.mxu0 %v443_v7  ;;  %98 = vmatpush.msra.mxu1 %v443_v7 }
  0x1c   :  { %122 = vmatpush.msra.mxu2 %v443_v7  ;;  %146 = vmatpush.msra.mxu3 %v443_v7 }
  0x1d   :  { %75 = vmatpush.msra.mxu0 %v449_v8  ;;  %99 = vmatpush.msra.mxu1 %v449_v8 }
  0x1e   :  { %123 = vmatpush.msra.mxu2 %v449_v8  ;;  %147 = vmatpush.msra.mxu3 %v449_v8 }
  0x1f   :  { %76 = vmatpush.msra.mxu0 %v455_v9  ;;  %100 = vmatpush.msra.mxu1 %v455_v9 }
  0x20   :  { %124 = vmatpush.msra.mxu2 %v455_v9  ;;  %148 = vmatpush.msra.mxu3 %v455_v9 }
  0x21   :  { %77 = vmatpush.msra.mxu0 %v461_v10  ;;  %101 = vmatpush.msra.mxu1 %v461_v10 }
  0x22   :  { %125 = vmatpush.msra.mxu2 %v461_v10  ;;  %149 = vmatpush.msra.mxu3 %v461_v10 }
  0x23   :  { %78 = vmatpush.msra.mxu0 %v467_v11  ;;  %102 = vmatpush.msra.mxu1 %v467_v11 }
  0x24   :  { %126 = vmatpush.msra.mxu2 %v467_v11  ;;  %150 = vmatpush.msra.mxu3 %v467_v11 }
  0x25   :  { %79 = vmatpush.msra.mxu0 %v473_v12  ;;  %103 = vmatpush.msra.mxu1 %v473_v12 }
  0x26   :  { %127 = vmatpush.msra.mxu2 %v473_v12  ;;  %151 = vmatpush.msra.mxu3 %v473_v12 }
  0x27   :  { %80 = vmatpush.msra.mxu0 %v479_v13  ;;  %104 = vmatpush.msra.mxu1 %v479_v13 }
  0x28   :  { %128 = vmatpush.msra.mxu2 %v479_v13  ;;  %152 = vmatpush.msra.mxu3 %v479_v13 }
  0x29   :  { %81 = vmatpush.msra.mxu0 %v485_v14  ;;  %105 = vmatpush.msra.mxu1 %v485_v14 }
  0x2a   :  { %129 = vmatpush.msra.mxu2 %v485_v14  ;;  %153 = vmatpush.msra.mxu3 %v485_v14 }
  0x2b   :  { %82 = vmatpush.msra.mxu0 %v491_v15  ;;  %106 = vmatpush.msra.mxu1 %v491_v15 }
  0x2c   :  { %83 = vmatmul.f32.vlgmr.msra.gmra.mxu0 %v384_v16  ;;  %130 = vmatpush.msra.mxu2 %v491_v15 }
  0x2d   :  { %154 = vmatpush.msra.mxu3 %v491_v15  ;;  %163 = vmatpush.msrb.mxu0 %v407_v0 }
  0x2e   :  { %187 = vmatpush.msrb.mxu1 %v407_v0  ;;  %211 = vmatpush.msrb.mxu2 %v407_v0 }
  0x2f   :  { %164 = vmatpush.msrb.mxu0 %v409_v1  ;;  %235 = vmatpush.msrb.mxu3 %v407_v0 }
  0x30   :  { %188 = vmatpush.msrb.mxu1 %v409_v1  ;;  %212 = vmatpush.msrb.mxu2 %v409_v1 }
  0x31   :  { %165 = vmatpush.msrb.mxu0 %v413_v2  ;;  %236 = vmatpush.msrb.mxu3 %v409_v1 }
  0x32   :  { %189 = vmatpush.msrb.mxu1 %v413_v2  ;;  %213 = vmatpush.msrb.mxu2 %v413_v2 }
  0x33   :  { %166 = vmatpush.msrb.mxu0 %v419_v3  ;;  %237 = vmatpush.msrb.mxu3 %v413_v2 }
  0x34   :  { %190 = vmatpush.msrb.mxu1 %v419_v3  ;;  %214 = vmatpush.msrb.mxu2 %v419_v3 }
  0x35   :  { %167 = vmatpush.msrb.mxu0 %v425_v4  ;;  %238 = vmatpush.msrb.mxu3 %v419_v3 }
  0x36   :  { %191 = vmatpush.msrb.mxu1 %v425_v4  ;;  %215 = vmatpush.msrb.mxu2 %v425_v4 }
  0x37   :  { %168 = vmatpush.msrb.mxu0 %v431_v5  ;;  %239 = vmatpush.msrb.mxu3 %v425_v4 }
  0x38   :  { %192 = vmatpush.msrb.mxu1 %v431_v5  ;;  %216 = vmatpush.msrb.mxu2 %v431_v5 }
  0x39   :  { %169 = vmatpush.msrb.mxu0 %v437_v6  ;;  %240 = vmatpush.msrb.mxu3 %v431_v5 }
  0x3a   :  { %193 = vmatpush.msrb.mxu1 %v437_v6  ;;  %217 = vmatpush.msrb.mxu2 %v437_v6 }
  0x3b   :  { %170 = vmatpush.msrb.mxu0 %v443_v7  ;;  %241 = vmatpush.msrb.mxu3 %v437_v6 }
  0x3c   :  { %194 = vmatpush.msrb.mxu1 %v443_v7  ;;  %218 = vmatpush.msrb.mxu2 %v443_v7 }
  0x3d   :  { %171 = vmatpush.msrb.mxu0 %v449_v8  ;;  %242 = vmatpush.msrb.mxu3 %v443_v7 }
  0x3e   :  { %195 = vmatpush.msrb.mxu1 %v449_v8  ;;  %219 = vmatpush.msrb.mxu2 %v449_v8 }
  0x3f   :  { %172 = vmatpush.msrb.mxu0 %v455_v9  ;;  %243 = vmatpush.msrb.mxu3 %v449_v8 }
  0x40   :  { %196 = vmatpush.msrb.mxu1 %v455_v9  ;;  %220 = vmatpush.msrb.mxu2 %v455_v9 }
  0x41   :  { %173 = vmatpush.msrb.mxu0 %v461_v10  ;;  %244 = vmatpush.msrb.mxu3 %v455_v9 }
  0x42   :  { %197 = vmatpush.msrb.mxu1 %v461_v10  ;;  %221 = vmatpush.msrb.mxu2 %v461_v10 }
  0x43   :  { %174 = vmatpush.msrb.mxu0 %v467_v11  ;;  %245 = vmatpush.msrb.mxu3 %v461_v10 }
  0x44   :  { %198 = vmatpush.msrb.mxu1 %v467_v11  ;;  %222 = vmatpush.msrb.mxu2 %v467_v11 }
  0x45   :  { %175 = vmatpush.msrb.mxu0 %v473_v12  ;;  %246 = vmatpush.msrb.mxu3 %v467_v11 }
  0x46   :  { %199 = vmatpush.msrb.mxu1 %v473_v12  ;;  %223 = vmatpush.msrb.mxu2 %v473_v12 }
  0x47   :  { %176 = vmatpush.msrb.mxu0 %v479_v13  ;;  %247 = vmatpush.msrb.mxu3 %v473_v12 }
  0x48   :  { %200 = vmatpush.msrb.mxu1 %v479_v13  ;;  %224 = vmatpush.msrb.mxu2 %v479_v13 }
  0x49   :  { %177 = vmatpush.msrb.mxu0 %v485_v14  ;;  %248 = vmatpush.msrb.mxu3 %v479_v13 }
  0x4a   :  { %201 = vmatpush.msrb.mxu1 %v485_v14  ;;  %225 = vmatpush.msrb.mxu2 %v485_v14 }
  0x4b   :  { %178 = vmatpush.msrb.mxu0 %v491_v15  ;;  %249 = vmatpush.msrb.mxu3 %v485_v14 }
  0x4c   :  { %202 = vmatpush.msrb.mxu1 %v491_v15  ;;  %226 = vmatpush.msrb.mxu2 %v491_v15 }
  0x4d   :  { %250 = vmatpush.msrb.mxu3 %v491_v15 }
  0xa9   :  { %v84_v18 = vpop.f32.mrf.mxu0 }
  0xaa   :  { %v87_v19 = vadd.f32 %v84_v18, %v66_v17 }
  0xac   :  { %286 = vtanh.f32 %v87_v19 }
  0xb2   :  { %v287_v20 = vpop.eup %286 }
  0xb3   :  { %107 = vmatmul.f32.vlgmr.msra.gmra.mxu1 %v287_v20 }
 0x130   :  { %v108_v22 = vpop.f32.mrf.mxu1 }
 0x131   :  { %v111_v23 = vadd.f32 %v108_v22, %v90_v21 }
 0x133   :  { %288 = vtanh.f32 %v111_v23 }
 0x139   :  { %v289_v24 = vpop.eup %288 }
 0x13a   :  { %131 = vmatmul.f32.vlgmr.msra.gmra.mxu2 %v289_v24 }
 0x1bd   :  { %v132_v26 = vpop.f32.mrf.mxu2 }
 0x1be   :  { %v135_v27 = vadd.f32 %v132_v26, %v114_v25 }
 0x1c0   :  { %290 = vtanh.f32 %v135_v27 }
 0x1c6   :  { %v291_v28 = vpop.eup %290 }
 0x1c7   :  { %155 = vmatmul.f32.vlgmr.msra.gmra.mxu3 %v291_v28 }
 0x24a   :  { %v156_v30 = vpop.f32.mrf.mxu3 }
 0x24b   :  { %v159_v31 = vadd.f32 %v156_v30, %v138_v29 }
 0x24d   :  { %292 = vtanh.f32 %v159_v31 }
 0x253   :  { %v293_v32 = vpop.eup %292 }
 0x254   :  { %179 = vmatmul.f32.vlgmr.msrb.gmra.mxu0 %v293_v32 }
 0x2d1   :  { %v180_v34 = vpop.f32.mrf.mxu0 }
 0x2d2   :  { %v183_v35 = vadd.f32 %v180_v34, %v162_v33 }
 0x2d4   :  { %294 = vtanh.f32 %v183_v35 }
 0x2da   :  { %v295_v36 = vpop.eup %294 }
 0x2db   :  { %203 = vmatmul.f32.vlgmr.msrb.gmra.mxu1 %v295_v36 }
 0x358   :  { %v204_v38 = vpop.f32.mrf.mxu1 }
 0x359   :  { %v207_v39 = vadd.f32 %v204_v38, %v186_v37 }
 0x35b   :  { %296 = vtanh.f32 %v207_v39 }
 0x361   :  { %v297_v40 = vpop.eup %296 }
 0x362   :  { %227 = vmatmul.f32.vlgmr.msrb.gmra.mxu2 %v297_v40 }
 0x3e5   :  { %v228_v42 = vpop.f32.mrf.mxu2 }
 0x3e6   :  { %v231_v43 = vadd.f32 %v228_v42, %v210_v41 }
 0x3e8   :  { %298 = vtanh.f32 %v231_v43 }
 0x3ee   :  { %v299_v44 = vpop.eup %298 }
 0x3ef   :  { %251 = vmatmul.f32.vlgmr.msrb.gmra.mxu3 %v299_v44 }
 0x472   :  { %v252_v46 = vpop.f32.mrf.mxu3 }
 0x473   :  { %v255_v47 = vadd.f32 %v252_v46, %v234_v45 }
 0x475   :  { %300 = vtanh.f32 %v255_v47 }
 0x47b   :  { %v301_v48 = vpop.eup %300 }
 0x47c   :  { %261 = vst [vmem:[#allocation8] sm:$0xff] %v301_v48 }
 0x47d   :  { %272 = dma.vmem_to_hbm [thread:$0]  %s268_s1, 128, %s270_s23, [#allocation5]  }
 0x47e   :  { %378 = dma.done.wait [#allocation5], 128  }
 0x47f   :  { %379 = vsyncadd [#allocation5], 4294967168 }
 0x480   :  { %277 = vsyncpa [#allocation4], 1 }
 0x481   :  { %278 = vsyncpa [#allocation7], 1 }
 0x482   :  { %279 = vsyncpa [#allocation5], 1 }

</bundles_post_ra>
